<compile_context>
chip_gen: v6e
topology: v6e:2x2x1
jax: 0.10.0
libtpu: 0.0.40
codegen_flags: <defaults>
</compile_context>

<pallas_src>
import jax
import jax.numpy as jnp
from jax.experimental import pallas as pl
from jax.experimental.pallas import tpu as pltpu

LANE = 128
OUT_W = 8  # lanes written back per row (q1 -> lane 0, q2 -> lane 1, rest padding)


def _round_up(x, m):
    return ((x + m - 1) // m) * m


def _cdiv(a, b):
    return -(-a // b)


# ----------------------------- kernel -----------------------------------------


def qnetwork_kernel(s_ref, a_ref, w1s_ref, w1a_ref, b1_ref, w2_ref, b2_ref,
                    w3_ref, b3_ref, q_ref):
    # Layer 1: fused Q1|Q2 first linear. State and action contributions are two small-K
    # dots summed in f32 — the padded 128-lane "xu" never exists in HBM.
    h1 = jnp.dot(s_ref[...], w1s_ref[...], preferred_element_type=jnp.float32)
    h1 = h1 + jnp.dot(a_ref[...], w1a_ref[...], preferred_element_type=jnp.float32)
    h1 = jnp.maximum(h1 + b1_ref[...], 0.0)

    # Layer 2: block-diagonal fused weight keeps the two Q towers independent
    # (tower 1 in lanes 0:H, tower 2 in lanes H:2H of the single 128-lane group).
    h2 = jnp.dot(h1, w2_ref[...], preferred_element_type=jnp.float32)
    h2 = jnp.maximum(h2 + b2_ref[...], 0.0)

    # Layer 3 heads: q1 lands in lane 0, q2 in lane 1; only the first OUT_W lanes are
    # written back (narrow output stream).
    q = jnp.dot(h2, w3_ref[...], preferred_element_type=jnp.float32) + b3_ref[...]
    q_ref[...] = q[:, : q_ref.shape[-1]]


# ----------------------------- wrapper -----------------------------------------


def qnetwork_forward(state, action, p, *, max_tile_b=1024, min_tiles=2):
    """state: (B, num_inputs), action: (B, num_actions). p: fused/packed params.

    Returns (q1, q2), each (B, 1) float32.
    """
    B, num_inputs = state.shape
    num_actions = action.shape[1]
    H2 = p["w2"].shape[0]           # packed hidden width (128 for hidden_dim<=64)
    OUT_LANES = p["w3"].shape[1]    # 128

    # --- batch tiling: >=min_tiles grid steps (v7x has 2 TensorCores), tail padding <= ~8
    # rows per tile, tile rows a multiple of 8 sublanes.
    n_tiles = max(_cdiv(B, max_tile_b), min_tiles if B > 8 else 1)
    tile_b = _round_up(_cdiv(B, n_tiles), 8)
    B_pad = _round_up(B, tile_b)
    grid = (B_pad // tile_b,)

    state_p = state.astype(jnp.float32)
    action_p = action.astype(jnp.float32)
    if B_pad != B:
        state_p = jnp.pad(state_p, ((0, B_pad - B), (0, 0)))
        action_p = jnp.pad(action_p, ((0, B_pad - B), (0, 0)))

    flops = 2 * B_pad * ((num_inputs + num_actions) * H2 + H2 * H2 + H2 * OUT_LANES)
    bytes_accessed = (
        B_pad * num_inputs * 4
        + B_pad * num_actions * 4
        + sum(int(p[k].size) * p[k].dtype.itemsize for k in p)
        + B_pad * OUT_W * 4
    )

    q = pl.pallas_call(
        qnetwork_kernel,
        out_shape=jax.ShapeDtypeStruct((B_pad, OUT_W), jnp.float32),
        grid=grid,
        in_specs=[
            pl.BlockSpec((tile_b, num_inputs), lambda i: (i, 0)),   # batch-tiled state
            pl.BlockSpec((tile_b, num_actions), lambda i: (i, 0)),  # batch-tiled action
            pl.BlockSpec((num_inputs, H2), lambda i: (0, 0)),       # weights resident in VMEM
            pl.BlockSpec((num_actions, H2), lambda i: (0, 0)),
            pl.BlockSpec((1, H2), lambda i: (0, 0)),
            pl.BlockSpec((H2, H2), lambda i: (0, 0)),
            pl.BlockSpec((1, H2), lambda i: (0, 0)),
            pl.BlockSpec((H2, OUT_LANES), lambda i: (0, 0)),
            pl.BlockSpec((1, OUT_LANES), lambda i: (0, 0)),
        ],
        out_specs=pl.BlockSpec((tile_b, OUT_W), lambda i: (i, 0)),
        compiler_params=pltpu.CompilerParams(
            dimension_semantics=("parallel",),
            vmem_limit_bytes=32 * 1024 * 1024,
        ),
        cost_estimate=pl.CostEstimate(
            flops=flops, transcendentals=0, bytes_accessed=bytes_accessed),
    )(state_p, action_p, p["w1s"], p["w1a"], p["b1"], p["w2"], p["b2"], p["w3"], p["b3"])

    q1 = q[:B, 0:1]
    q2 = q[:B, 1:2]
    return q1, q2


# ----------------------------- params -----------------------------------------


def init_raw_params(key, num_inputs, num_actions, hidden_dim):
    """PyTorch-equivalent params: xavier_uniform(gain=1) weights (stored as (in,out)), zero bias."""
    in_dim = num_inputs + num_actions
    ks = jax.random.split(key, 6)

    def xavier(k, fi, fo):
        lim = jnp.sqrt(6.0 / (fi + fo))
        return jax.random.uniform(k, (fi, fo), jnp.float32, -lim, lim)

    return dict(
        w1=xavier(ks[0], in_dim, hidden_dim), b1=jnp.zeros((hidden_dim,), jnp.float32),
        w2=xavier(ks[1], hidden_dim, hidden_dim), b2=jnp.zeros((hidden_dim,), jnp.float32),
        w3=xavier(ks[2], hidden_dim, 1), b3=jnp.zeros((1,), jnp.float32),
        w4=xavier(ks[3], in_dim, hidden_dim), b4=jnp.zeros((hidden_dim,), jnp.float32),
        w5=xavier(ks[4], hidden_dim, hidden_dim), b5=jnp.zeros((hidden_dim,), jnp.float32),
        w6=xavier(ks[5], hidden_dim, 1), b6=jnp.zeros((1,), jnp.float32),
    )


def build_fused_params(raw, num_inputs, num_actions, hidden_dim):
    """Pack the two Q towers into ONE 128-lane group.

    Tower-1 hidden units live in lanes 0:H, tower-2 in lanes H:2H; padding lanes are zero,
    and the block-diagonal layer-2 weight keeps the towers independent. Layer-1 weights
    are split by input source (state rows / action rows) so the kernel can consume the
    raw, un-padded state/action arrays.
    """
    H = hidden_dim
    H2 = _round_up(2 * H, LANE)     # 128 for hidden_dim <= 64
    OUT_LANES = LANE

    w1s = jnp.zeros((num_inputs, H2), jnp.float32)
    w1s = w1s.at[:, :H].set(raw["w1"][:num_inputs])
    w1s = w1s.at[:, H:2 * H].set(raw["w4"][:num_inputs])

    w1a = jnp.zeros((num_actions, H2), jnp.float32)
    w1a = w1a.at[:, :H].set(raw["w1"][num_inputs:])
    w1a = w1a.at[:, H:2 * H].set(raw["w4"][num_inputs:])

    b1 = jnp.zeros((1, H2), jnp.float32)
    b1 = b1.at[0, :H].set(raw["b1"]).at[0, H:2 * H].set(raw["b4"])

    w2 = jnp.zeros((H2, H2), jnp.float32)                       # block-diagonal
    w2 = w2.at[:H, :H].set(raw["w2"]).at[H:2 * H, H:2 * H].set(raw["w5"])
    b2 = jnp.zeros((1, H2), jnp.float32)
    b2 = b2.at[0, :H].set(raw["b2"]).at[0, H:2 * H].set(raw["b5"])

    w3 = jnp.zeros((H2, OUT_LANES), jnp.float32)
    w3 = w3.at[:H, 0:1].set(raw["w3"]).at[H:2 * H, 1:2].set(raw["w6"])
    b3 = jnp.zeros((1, OUT_LANES), jnp.float32)
    b3 = b3.at[0, 0].set(raw["b3"][0]).at[0, 1].set(raw["b6"][0])

    return dict(w1s=w1s, w1a=w1a, b1=b1, w2=w2, b2=b2, w3=w3, b3=b3)


# ----------------------------- reference ---------------------------------------


def reference_forward(state, action, raw):
    """Pure-JAX mirror of QNetwork.forward (continuous branch), full f32 like PyTorch."""
    xu = jnp.concatenate([state, action], axis=1).astype(jnp.float32)

    def lin(x, w, b):
        return jnp.dot(x, w, precision=jax.lax.Precision.HIGHEST) + b

    x1 = jnp.maximum(lin(xu, raw["w1"], raw["b1"]), 0.0)
    x1 = jnp.maximum(lin(x1, raw["w2"], raw["b2"]), 0.0)
    q1 = lin(x1, raw["w3"], raw["b3"])

    x2 = jnp.maximum(lin(xu, raw["w4"], raw["b4"]), 0.0)
    x2 = jnp.maximum(lin(x2, raw["w5"], raw["b5"]), 0.0)
    q2 = lin(x2, raw["w6"], raw["b6"])
    return q1, q2


if __name__ == "__main__":
    # Small shapes consistent with the module: state dim 8, 4 actions, hidden 32.
    batch, num_inputs, num_actions, hidden_dim = 2, 8, 4, 32

    key = jax.random.PRNGKey(0)
    k_params, k_state, k_action = jax.random.split(key, 3)
    raw = init_raw_params(k_params, num_inputs, num_actions, hidden_dim)
    fused = build_fused_params(raw, num_inputs, num_actions, hidden_dim)

    state = jax.random.normal(k_state, (batch, num_inputs), jnp.float32)
    action = jax.random.normal(k_action, (batch, num_actions), jnp.float32)

    q1, q2 = qnetwork_forward(state, action, fused)
    jax.block_until_ready((q1, q2))

    r1, r2 = reference_forward(state, action, raw)
    assert q1.shape == (batch, 1) and q2.shape == (batch, 1)
    # Tolerance accounts for the TPU's default (reduced-precision) f32 matmul passes.
    assert jnp.allclose(q1, r1, atol=1e-2, rtol=1e-2), (q1, r1)
    assert jnp.allclose(q2, r2, atol=1e-2, rtol=1e-2), (q2, r2)

    print("KERNEL_OK")
</pallas_src>

<mosaic_0001>
module attributes {stable_mosaic.version = 11 : i64} {
  func.func @qnetwork_kernel(%arg0: i32, %arg1: memref<8x8xf32, #tpu.memory_space<vmem>>, %arg2: memref<8x4xf32, #tpu.memory_space<vmem>>, %arg3: memref<8x128xf32, #tpu.memory_space<vmem>>, %arg4: memref<4x128xf32, #tpu.memory_space<vmem>>, %arg5: memref<1x128xf32, #tpu.memory_space<vmem>>, %arg6: memref<128x128xf32, #tpu.memory_space<vmem>>, %arg7: memref<1x128xf32, #tpu.memory_space<vmem>>, %arg8: memref<128x128xf32, #tpu.memory_space<vmem>>, %arg9: memref<1x128xf32, #tpu.memory_space<vmem>>, %arg10: memref<8x8xf32, #tpu.memory_space<vmem>>) attributes {dimension_semantics = [#tpu.dimension_semantics<parallel>], iteration_bounds = array<i64: 1>, scalar_prefetch = 0 : i64, scratch_operands = 0 : i64, tpu.core_type = #tpu.core_type<tc>, window_params = [{transform_indices = @transform_0, window_bounds = array<i64: 8, 8>}, {transform_indices = @transform_1, window_bounds = array<i64: 8, 4>}, {pipeline_mode = #tpu.pipeline_mode<synchronous>, transform_indices = @transform_2, window_bounds = array<i64: 8, 128>}, {pipeline_mode = #tpu.pipeline_mode<synchronous>, transform_indices = @transform_3, window_bounds = array<i64: 4, 128>}, {pipeline_mode = #tpu.pipeline_mode<synchronous>, transform_indices = @transform_4, window_bounds = array<i64: 1, 128>}, {pipeline_mode = #tpu.pipeline_mode<synchronous>, transform_indices = @transform_5, window_bounds = array<i64: 128, 128>}, {pipeline_mode = #tpu.pipeline_mode<synchronous>, transform_indices = @transform_6, window_bounds = array<i64: 1, 128>}, {pipeline_mode = #tpu.pipeline_mode<synchronous>, transform_indices = @transform_7, window_bounds = array<i64: 128, 128>}, {pipeline_mode = #tpu.pipeline_mode<synchronous>, transform_indices = @transform_8, window_bounds = array<i64: 1, 128>}, {transform_indices = @transform_9, window_bounds = array<i64: 8, 8>}]} {
    %c0 = arith.constant 0 : index
    %c0_0 = arith.constant 0 : index
    %0 = vector.load %arg1[%c0, %c0_0] : memref<8x8xf32, #tpu.memory_space<vmem>>, vector<8x8xf32>
    %c0_1 = arith.constant 0 : index
    %c0_2 = arith.constant 0 : index
    %1 = vector.load %arg3[%c0_1, %c0_2] : memref<8x128xf32, #tpu.memory_space<vmem>>, vector<8x128xf32>
    %cst = arith.constant dense<0.000000e+00> : vector<8x128xf32>
    %2 = tpu.matmul %0, %1, %cst {dimension_numbers = #tpu.dot_dimension_numbers<[1], [0], [0], [1], [0, 0, 1, 1], [], []>} : vector<8x8xf32>, vector<8x128xf32>, vector<8x128xf32> -> vector<8x128xf32>
    %c0_3 = arith.constant 0 : index
    %c0_4 = arith.constant 0 : index
    %3 = vector.load %arg2[%c0_3, %c0_4] : memref<8x4xf32, #tpu.memory_space<vmem>>, vector<8x4xf32>
    %c0_5 = arith.constant 0 : index
    %c0_6 = arith.constant 0 : index
    %4 = vector.load %arg4[%c0_5, %c0_6] : memref<4x128xf32, #tpu.memory_space<vmem>>, vector<4x128xf32>
    %cst_7 = arith.constant dense<0.000000e+00> : vector<8x128xf32>
    %5 = tpu.matmul %3, %4, %cst_7 {dimension_numbers = #tpu.dot_dimension_numbers<[1], [0], [0], [1], [0, 0, 1, 1], [], []>} : vector<8x4xf32>, vector<4x128xf32>, vector<8x128xf32> -> vector<8x128xf32>
    %6 = arith.addf %2, %5 : vector<8x128xf32>
    %c0_8 = arith.constant 0 : index
    %c0_9 = arith.constant 0 : index
    %7 = vector.load %arg5[%c0_8, %c0_9] : memref<1x128xf32, #tpu.memory_space<vmem>>, vector<1x128xf32>
    %8 = vector.broadcast %7 : vector<1x128xf32> to vector<8x128xf32>
    %9 = arith.addf %6, %8 : vector<8x128xf32>
    %cst_10 = arith.constant 0.000000e+00 : f32
    %10 = vector.broadcast %cst_10 : f32 to vector<8x128xf32>
    %11 = arith.maximumf %9, %10 : vector<8x128xf32>
    %c0_11 = arith.constant 0 : index
    %c0_12 = arith.constant 0 : index
    %12 = vector.load %arg6[%c0_11, %c0_12] : memref<128x128xf32, #tpu.memory_space<vmem>>, vector<128x128xf32>
    %cst_13 = arith.constant dense<0.000000e+00> : vector<8x128xf32>
    %13 = tpu.matmul %11, %12, %cst_13 {dimension_numbers = #tpu.dot_dimension_numbers<[1], [0], [0], [1], [0, 0, 1, 1], [], []>} : vector<8x128xf32>, vector<128x128xf32>, vector<8x128xf32> -> vector<8x128xf32>
    %c0_14 = arith.constant 0 : index
    %c0_15 = arith.constant 0 : index
    %14 = vector.load %arg7[%c0_14, %c0_15] : memref<1x128xf32, #tpu.memory_space<vmem>>, vector<1x128xf32>
    %15 = vector.broadcast %14 : vector<1x128xf32> to vector<8x128xf32>
    %16 = arith.addf %13, %15 : vector<8x128xf32>
    %cst_16 = arith.constant 0.000000e+00 : f32
    %17 = vector.broadcast %cst_16 : f32 to vector<8x128xf32>
    %18 = arith.maximumf %16, %17 : vector<8x128xf32>
    %c0_17 = arith.constant 0 : index
    %c0_18 = arith.constant 0 : index
    %19 = vector.load %arg8[%c0_17, %c0_18] : memref<128x128xf32, #tpu.memory_space<vmem>>, vector<128x128xf32>
    %cst_19 = arith.constant dense<0.000000e+00> : vector<8x128xf32>
    %20 = tpu.matmul %18, %19, %cst_19 {dimension_numbers = #tpu.dot_dimension_numbers<[1], [0], [0], [1], [0, 0, 1, 1], [], []>} : vector<8x128xf32>, vector<128x128xf32>, vector<8x128xf32> -> vector<8x128xf32>
    %c0_20 = arith.constant 0 : index
    %c0_21 = arith.constant 0 : index
    %21 = vector.load %arg9[%c0_20, %c0_21] : memref<1x128xf32, #tpu.memory_space<vmem>>, vector<1x128xf32>
    %22 = vector.broadcast %21 : vector<1x128xf32> to vector<8x128xf32>
    %23 = arith.addf %20, %22 : vector<8x128xf32>
    %24 = vector.extract_strided_slice %23 {offsets = [0, 0], sizes = [8, 8], strides = [1, 1]} : vector<8x128xf32> to vector<8x8xf32>
    %c0_22 = arith.constant 0 : index
    %c0_23 = arith.constant 0 : index
    %25 = vector.load %arg10[%c0_22, %c0_23] : memref<8x8xf32, #tpu.memory_space<vmem>>, vector<8x8xf32>
    tpu.vector_store %arg10[%c0_22, %c0_23], %24 {strides = array<i32>} : memref<8x8xf32, #tpu.memory_space<vmem>>, vector<8x8xf32>,
    return
  }
  func.func @transform_0(%arg0: i32) -> (i32, i32) {
    %c0_i32 = arith.constant 0 : i32
    %c0_i32_0 = arith.constant 0 : i32
    return %arg0, %c0_i32 : i32, i32
  }
  func.func @transform_1(%arg0: i32) -> (i32, i32) {
    %c0_i32 = arith.constant 0 : i32
    %c0_i32_0 = arith.constant 0 : i32
    return %arg0, %c0_i32 : i32, i32
  }
  func.func @transform_2(%arg0: i32) -> (i32, i32) {
    %c0_i32 = arith.constant 0 : i32
    %c0_i32_0 = arith.constant 0 : i32
    %c0_i32_1 = arith.constant 0 : i32
    return %c0_i32, %c0_i32_0 : i32, i32
  }
  func.func @transform_3(%arg0: i32) -> (i32, i32) {
    %c0_i32 = arith.constant 0 : i32
    %c0_i32_0 = arith.constant 0 : i32
    %c0_i32_1 = arith.constant 0 : i32
    return %c0_i32, %c0_i32_0 : i32, i32
  }
  func.func @transform_4(%arg0: i32) -> (i32, i32) {
    %c0_i32 = arith.constant 0 : i32
    %c0_i32_0 = arith.constant 0 : i32
    %c0_i32_1 = arith.constant 0 : i32
    return %c0_i32, %c0_i32_0 : i32, i32
  }
  func.func @transform_5(%arg0: i32) -> (i32, i32) {
    %c0_i32 = arith.constant 0 : i32
    %c0_i32_0 = arith.constant 0 : i32
    %c0_i32_1 = arith.constant 0 : i32
    return %c0_i32, %c0_i32_0 : i32, i32
  }
  func.func @transform_6(%arg0: i32) -> (i32, i32) {
    %c0_i32 = arith.constant 0 : i32
    %c0_i32_0 = arith.constant 0 : i32
    %c0_i32_1 = arith.constant 0 : i32
    return %c0_i32, %c0_i32_0 : i32, i32
  }
  func.func @transform_7(%arg0: i32) -> (i32, i32) {
    %c0_i32 = arith.constant 0 : i32
    %c0_i32_0 = arith.constant 0 : i32
    %c0_i32_1 = arith.constant 0 : i32
    return %c0_i32, %c0_i32_0 : i32, i32
  }
  func.func @transform_8(%arg0: i32) -> (i32, i32) {
    %c0_i32 = arith.constant 0 : i32
    %c0_i32_0 = arith.constant 0 : i32
    %c0_i32_1 = arith.constant 0 : i32
    return %c0_i32, %c0_i32_0 : i32, i32
  }
  func.func @transform_9(%arg0: i32) -> (i32, i32) {
    %c0_i32 = arith.constant 0 : i32
    %c0_i32_0 = arith.constant 0 : i32
    return %arg0, %c0_i32 : i32, i32
  }
}

</mosaic_0001>

<bundles_post_ra>
// kernel: tpu_custom_call.1
= control target key start
LH: loop header
LB: loop body
LE: loop exit
PB: predicated region body
PF: predicated region fallthrough
CT: control target
= control target key end

     0   :  { %14 = vsyncpa [#allocation3], 0  ;;  %s791_s0 = inlined_call_operand.vmem [shape: f32[8,8], index: 0, kind: input, shape index: {}]   ;;  %s792_s1 = inlined_call_operand.vmem [shape: f32[8,4], index: 1, kind: input, shape index: {}]   ;;  %s793_s2 = inlined_call_operand.hbm [shape: f32[8,128], index: 2, kind: input, shape index: {}]   ;;  %s794_s3 = inlined_call_operand.vmem [shape: f32[4,128], index: 3, kind: input, shape index: {}]   ;;  %s795_s4 = inlined_call_operand.vmem [shape: f32[1,128], index: 4, kind: input, shape index: {}]   ;;  %s796_s5 = inlined_call_operand.hbm [shape: f32[128,128], index: 5, kind: input, shape index: {}]   ;;  %s797_s6 = inlined_call_operand.vmem [shape: f32[1,128], index: 6, kind: input, shape index: {}]   ;;  %s798_s7 = inlined_call_operand.hbm [shape: f32[128,128], index: 7, kind: input, shape index: {}]   ;;  %s799_s8 = inlined_call_operand.vmem [shape: f32[1,128], index: 8, kind: input, shape index: {}]   ;;  %s800_s9 = inlined_call_operand.hbm [shape: f32[8,8], index: 9, kind: output, shape index: {}]  }
   0x1   :  { %15 = vsyncpa [#allocation6], 0 }
   0x2   :  { %16 = vsyncpa [#allocation4], 0  ;;  %s659_s30 = smov [#allocation5]  }
   0x3   :  { %s40_s10 = sshll.u32 %s659_s30, 4  ;;  %s41_s10 = int_to_ptr.vmem [resolvable:$true] %s40_s10 }
   0x4   :  { %s581_s11 = scalar_lea.vmem %s41_s10, 2048  ;;  %p586_p1 = scmp.lt.s32.totalorder %s41_s10, %s41_s10 }
   0x5   :  { %p582_p0 = scmp.ne.s32.totalorder %s41_s10, %s581_s11  ;;  %p587_p2 = scmp.lt.s32.totalorder %s581_s11, %s581_s11 }
   0x7   :  { %p588_p3 = por %p587_p2, %p586_p1 }
   0x9   :  { %p589_p4 = pnand %p588_p3, %p582_p0 }
   0xb   :  { %592 = shalt.err (!%p589_p4)
}
   0xc   :  { %s660_s12 = smov 128   ;;  %s661_s13 = smov 8  }
   0xd   :  { %46 = dma.hbm_to_vmem [thread:$0]  %s796_s5, 2048, %s41_s10, [#allocation6], %s660_s12, %s660_s12, %s661_s13  }
   0xe   :  { %s662_s16 = smov [#allocation2]   ;;  %s663_s18 = smov [#allocation7]  }
   0xf   :  { %s27_s17 = sshll.u32 %s662_s16, 4  ;;  %s54_s19 = sshll.u32 %s663_s18, 4  ;;  %s28_s17 = int_to_ptr.vmem [resolvable:$true] %s27_s17  ;;  %s55_s19 = int_to_ptr.vmem [resolvable:$true] %s54_s19 }
  0x10   :  { %s601_s20 = scalar_lea.vmem %s28_s17, 128  ;;  %p606_p6 = scmp.lt.s32.totalorder %s28_s17, %s28_s17 }
  0x11   :  { %p602_p5 = scmp.ne.s32.totalorder %s28_s17, %s601_s20  ;;  %p607_p7 = scmp.lt.s32.totalorder %s601_s20, %s601_s20 }
  0x13   :  { %p608_p8 = por %p607_p7, %p606_p6 }
  0x15   :  { %p609_p9 = pnand %p608_p8, %p602_p5 }
  0x17   :  { %612 = shalt.err (!%p609_p9)
}
  0x18   :  { %30 = dma.hbm_to_vmem [thread:$0]  %s793_s2, 128, %s28_s17, [#allocation3]  }
  0x19   :  { %s621_s23 = scalar_lea.vmem %s55_s19, 2048  ;;  %p626_p11 = scmp.lt.s32.totalorder %s55_s19, %s55_s19 }
  0x1a   :  { %p622_p10 = scmp.ne.s32.totalorder %s55_s19, %s621_s23  ;;  %p627_p12 = scmp.lt.s32.totalorder %s621_s23, %s621_s23 }
  0x1c   :  { %p628_p13 = por %p627_p12, %p626_p11 }
  0x1e   :  { %p629_p0 = pnand %p628_p13, %p622_p10 }
  0x20   :  { %632 = shalt.err (!%p629_p0)
}
  0x21   :  { %60 = dma.hbm_to_vmem [thread:$0]  %s798_s7, 2048, %s55_s19, [#allocation6], %s660_s12, %s660_s12, %s661_s13  }
  0x22   :  { %653 = dma.done.wait [#allocation3], 128  }
  0x23   :  { %654 = vsyncadd [#allocation3], 4294967168 }
  0x24   :  { %655 = dma.done.wait [#allocation6], 4096  }
  0x25   :  { %656 = vsyncadd [#allocation6], 4294963200  ;;  %v664_v0 = vmov 0.0   ;;  %vm665_vm0 = vmmov 0   ;;  %vm80_vm1 = vcmask 1043456   ;;  %vm76_vm2 = vcmask 31744  }
  0x26   :  { %485 = vmatprep.subr.mxu0 %v664_v0  ;;  %490 = vmatprep.subr.mxu1 %v664_v0  ;;  %vm154_vm3 = vcmask 64512   ;;  %v75_v1 = vld [vmem:[%s794_s3] sm:$0xf]  ;;  %v251_v6 = vld [vmem:[#allocation5 + $0x70] sm:$0xff]  ;;  %v250_v7 = vld [vmem:[#allocation5 + $0x68] sm:$0xff]  ;;  %s666_s10 = smov [#allocation8]  }
  0x27   :  { %487 = vmatprep.mubr.msk.f32.mxu0 %vm665_vm0, %v664_v0  ;;  %492 = vmatprep.mubr.msk.f32.mxu1 %vm665_vm0, %v664_v0  ;;  %v73_v2 = vld [vmem:[#allocation2] sm:$0xff]  ;;  %v249_v8 = vld [vmem:[#allocation5 + $0x60] sm:$0xff]  ;;  %v247_v10 = vld [vmem:[#allocation5 + $0x50] sm:$0xff]  ;;  %s431_s11 = sshll.u32 %s666_s10, 4  ;;  %s432_s11 = int_to_ptr.vmem [resolvable:$true] %s431_s11 }
  0x28   :  { %v74_v3 = vld [vmem:[%s792_s1] sm:$0xff]  ;;  %486 = vmatpush3.msk.msra.mxu0 %vm80_vm1, %v75_v1  ;;  %491 = vmatpush3.msra.mxu1 %v73_v2  ;;  %v246_v11 = vld [vmem:[#allocation5 + $0x48] sm:$0xff]  ;;  %v245_v12 = vld [vmem:[#allocation5 + $0x40] sm:$0xff]  ;;  %s633_s12 = scalar_lea.vmem %s432_s11, 128  ;;  %p638_p2 = scmp.lt.s32.totalorder %s432_s11, %s432_s11 }
  0x29   :  { %v72_v4 = vld [vmem:[%s791_s0] sm:$0xff]  ;;  %488 = vmatmul.mubr.msk.f32.vlgmr.msra.gmra.mxu0 %vm76_vm2, %v74_v3  ;;  %495 = vmatprep.subr.mxu0 %v664_v0  ;;  %v243_v14 = vld [vmem:[#allocation5 + $0x30] sm:$0xff]  ;;  %v242_v15 = vld [vmem:[#allocation5 + $0x28] sm:$0xff]  ;;  %p634_p1 = scmp.ne.s32.totalorder %s432_s11, %s633_s12  ;;  %p639_p3 = scmp.lt.s32.totalorder %s633_s12, %s633_s12 }
  0x2a   :  { %v252_v5 = vld [vmem:[#allocation5 + $0x78] sm:$0xff]  ;;  %493 = vmatmul.mubr.msk.f32.vlgmr.msra.gmra.mxu1 %vm154_vm3, %v72_v4  ;;  %527 = vmatprep.mubr.msk.f32.mxu0 %vm665_vm0, %v664_v0  ;;  %v241_v16 = vld [vmem:[#allocation5 + $0x20] sm:$0xff]  ;;  %v239_v18 = vld [vmem:[#allocation5 + $0x10] sm:$0xff] }
  0x2b   :  { %496 = vmatpush3.msra.mxu0 %v252_v5  ;;  %530 = vmatprep.subr.mxu1 %v664_v0  ;;  %v248_v9 = vld [vmem:[#allocation5 + $0x58] sm:$0xff]  ;;  %v238_v19 = vld [vmem:[#allocation5 + $0x8] sm:$0xff]  ;;  %v237_v20 = vld [vmem:[#allocation5] sm:$0xff]  ;;  %p640_p4 = por %p639_p3, %p638_p2 }
  0x2c   :  { %497 = vmatprep.subr.mxu0 %v664_v0  ;;  %562 = vmatprep.mubr.msk.f32.mxu1 %vm665_vm0, %v664_v0  ;;  %v244_v13 = vld [vmem:[#allocation5 + $0x38] sm:$0xff]  ;;  %v345_v22 = vld [vmem:[#allocation7 + $0x70] sm:$0xff]  ;;  %v344_v23 = vld [vmem:[#allocation7 + $0x68] sm:$0xff] }
  0x2d   :  { %498 = vmatpush3.msra.mxu0 %v251_v6  ;;  %v240_v17 = vld [vmem:[#allocation5 + $0x18] sm:$0xff]  ;;  %v343_v24 = vld [vmem:[#allocation7 + $0x60] sm:$0xff]  ;;  %v341_v26 = vld [vmem:[#allocation7 + $0x50] sm:$0xff]  ;;  %p641_p5 = pnand %p640_p4, %p634_p1 }
  0x2e   :  { %499 = vmatprep.subr.mxu0 %v664_v0  ;;  %v346_v21 = vld [vmem:[#allocation7 + $0x78] sm:$0xff]  ;;  %v340_v27 = vld [vmem:[#allocation7 + $0x48] sm:$0xff]  ;;  %v339_v28 = vld [vmem:[#allocation7 + $0x40] sm:$0xff] }
  0x2f   :  { %500 = vmatpush3.msra.mxu0 %v250_v7  ;;  %531 = vmatpush3.msra.mxu1 %v346_v21  ;;  %v342_v25 = vld [vmem:[#allocation7 + $0x58] sm:$0xff]  ;;  %v337_v30 = vld [vmem:[#allocation7 + $0x30] sm:$0xff]  ;;  %v336_v31 = vld [vmem:[#allocation7 + $0x28] sm:$0xff] }
  0x30   :  { %501 = vmatprep.subr.mxu0 %v664_v0  ;;  %532 = vmatprep.subr.mxu1 %v664_v0  ;;  %v338_v29 = vld [vmem:[#allocation7 + $0x38] sm:$0xff]  ;;  %v335_v32 = vld [vmem:[#allocation7 + $0x20] sm:$0xff]  ;;  %v333_v42 = vld [vmem:[#allocation7 + $0x10] sm:$0xff] }
  0x31   :  { %502 = vmatpush3.msra.mxu0 %v249_v8  ;;  %533 = vmatpush3.msra.mxu1 %v345_v22  ;;  %v334_v33 = vld [vmem:[#allocation7 + $0x18] sm:$0xff]  ;;  %v332_v43 = vld [vmem:[#allocation7 + $0x8] sm:$0xff]  ;;  %v331_v44 = vld [vmem:[#allocation7] sm:$0xff] }
  0x32   :  { %503 = vmatprep.subr.mxu0 %v664_v0  ;;  %534 = vmatprep.subr.mxu1 %v664_v0  ;;  %v444_v36 = vld [vmem:[%s795_s4] ss:$0 sm:$0xff] }
  0x33   :  { %504 = vmatpush3.msra.mxu0 %v248_v9  ;;  %535 = vmatpush3.msra.mxu1 %v344_v23  ;;  %v445_v45 = vld [vmem:[%s797_s6] ss:$0 sm:$0xff] }
  0x34   :  { %505 = vmatprep.subr.mxu0 %v664_v0  ;;  %536 = vmatprep.subr.mxu1 %v664_v0  ;;  %v446_v50 = vld [vmem:[%s799_s8] ss:$0 sm:$0xff] }
  0x35   :  { %506 = vmatpush3.msra.mxu0 %v247_v10  ;;  %537 = vmatpush3.msra.mxu1 %v343_v24 }
  0x36   :  { %507 = vmatprep.subr.mxu0 %v664_v0  ;;  %538 = vmatprep.subr.mxu1 %v664_v0 }
  0x37   :  { %508 = vmatpush3.msra.mxu0 %v246_v11  ;;  %539 = vmatpush3.msra.mxu1 %v342_v25 }
  0x38   :  { %509 = vmatprep.subr.mxu0 %v664_v0  ;;  %540 = vmatprep.subr.mxu1 %v664_v0 }
  0x39   :  { %510 = vmatpush3.msra.mxu0 %v245_v12  ;;  %541 = vmatpush3.msra.mxu1 %v341_v26 }
  0x3a   :  { %511 = vmatprep.subr.mxu0 %v664_v0  ;;  %542 = vmatprep.subr.mxu1 %v664_v0 }
  0x3b   :  { %512 = vmatpush3.msra.mxu0 %v244_v13  ;;  %543 = vmatpush3.msra.mxu1 %v340_v27 }
  0x3c   :  { %513 = vmatprep.subr.mxu0 %v664_v0  ;;  %544 = vmatprep.subr.mxu1 %v664_v0 }
  0x3d   :  { %514 = vmatpush3.msra.mxu0 %v243_v14  ;;  %545 = vmatpush3.msra.mxu1 %v339_v28 }
  0x3e   :  { %515 = vmatprep.subr.mxu0 %v664_v0  ;;  %546 = vmatprep.subr.mxu1 %v664_v0 }
  0x3f   :  { %516 = vmatpush3.msra.mxu0 %v242_v15  ;;  %547 = vmatpush3.msra.mxu1 %v338_v29 }
  0x40   :  { %517 = vmatprep.subr.mxu0 %v664_v0  ;;  %548 = vmatprep.subr.mxu1 %v664_v0 }
  0x41   :  { %518 = vmatpush3.msra.mxu0 %v241_v16  ;;  %549 = vmatpush3.msra.mxu1 %v337_v30 }
  0x42   :  { %519 = vmatprep.subr.mxu0 %v664_v0  ;;  %550 = vmatprep.subr.mxu1 %v664_v0 }
  0x43   :  { %520 = vmatpush3.msra.mxu0 %v240_v17  ;;  %551 = vmatpush3.msra.mxu1 %v336_v31 }
  0x44   :  { %521 = vmatprep.subr.mxu0 %v664_v0  ;;  %552 = vmatprep.subr.mxu1 %v664_v0 }
  0x45   :  { %522 = vmatpush3.msra.mxu0 %v239_v18  ;;  %553 = vmatpush3.msra.mxu1 %v335_v32 }
  0x46   :  { %523 = vmatprep.subr.mxu0 %v664_v0  ;;  %554 = vmatprep.subr.mxu1 %v664_v0 }
  0x47   :  { %524 = vmatpush3.msra.mxu0 %v238_v19  ;;  %555 = vmatpush3.msra.mxu1 %v334_v33 }
  0x48   :  { %525 = vmatprep.subr.mxu0 %v664_v0  ;;  %556 = vmatprep.subr.mxu1 %v664_v0 }
  0x49   :  { %526 = vmatpush3.msra.mxu0 %v237_v20  ;;  %557 = vmatpush3.msra.mxu1 %v333_v42 }
  0x4a   :  { %558 = vmatprep.subr.mxu1 %v664_v0 }
  0x4b   :  { %559 = vmatpush3.msra.mxu1 %v332_v43 }
  0x4c   :  { %560 = vmatprep.subr.mxu1 %v664_v0 }
  0x4d   :  { %561 = vmatpush3.msra.mxu1 %v331_v44 }
  0xe9   :  { %v150_v34 = vpop.f32.mrf.mxu0 }
  0xea   :  { %v224_v35 = vpop.f32.mrf.mxu1 }
  0xeb   :  { %v225_v37 = vadd.f32 %v224_v35, %v150_v34  ;;  %v489_v38 = vpop.f32.mrf.mxu0 }
  0xec   :  { %v494_v39 = vpop.f32.mrf.mxu1 }
  0xed   :  { %v235_v40 = vadd.f32 %v444_v36, %v225_v37 }
  0xef   :  { %v236_v41 = vmax.f32 %v235_v40, 0.0 }
  0xf1   :  { %528 = vmatmul.mubr.f32.vlgmr.msra.gmra.mxu0 %v236_v41 }
 0x1b1   :  { %v326_v46 = vpop.f32.mrf.mxu0 }
 0x1b2   :  { %v327_v47 = vadd.f32 %v445_v45, %v326_v46 }
 0x1b3   :  { %v529_v48 = vpop.f32.mrf.mxu0 }
 0x1b4   :  { %v330_v49 = vmax.f32 %v327_v47, 0.0 }
 0x1b6   :  { %563 = vmatmul.mubr.f32.vlgmr.msra.gmra.mxu1 %v330_v49 }
 0x276   :  { %v420_v51 = vpop.f32.mrf.mxu1 }
 0x277   :  { %v421_v52 = vadd.f32 %v446_v50, %v420_v51 }
 0x278   :  { %v564_v53 = vpop.f32.mrf.mxu1 }
 0x279   :  { %424 = vst.msk [vmem:[#allocation8] sm:$0xff] %vm154_vm3, %v421_v52 }
 0x27a   :  { %644 = shalt.err (!%p641_p5)
}
 0x27b   :  { %434 = dma.vmem_to_hbm [thread:$0]  %s432_s11, 128, %s800_s9, [#allocation4]  }
 0x27c   :  { %657 = dma.done.wait [#allocation4], 128  }
 0x27d   :  { %658 = vsyncadd [#allocation4], 4294967168 }
 0x27e   :  { %438 = vsyncpa [#allocation3], 1 }
 0x27f   :  { %439 = vsyncpa [#allocation6], 1 }
 0x280   :  { %440 = vsyncpa [#allocation4], 1 }

</bundles_post_ra>
